<compile_context>
chip_gen: v7x
topology: tpu7x:2x2x1
jax: 0.10.0
libtpu: 0.0.40
codegen_flags: <defaults>
</compile_context>

<pallas_src>
import math
import numpy as np
import jax
import jax.numpy as jnp
from jax.experimental import pallas as pl
from jax.experimental.pallas import tpu as pltpu

# ---------------------------------------------------------------------------
# Problem sizes (small, consistent with the module)
# ---------------------------------------------------------------------------
BATCH = 8
OBS_DIM = 16
HIDDEN = (32, 32)
ACT_DIM = 4
LN_EPS = 1e-5                      # PyTorch nn.LayerNorm default eps
LOG_2PI = math.log(2.0 * math.pi)

_W = HIDDEN[1]                                   # slab lane width (32)
_W_ROWS = OBS_DIM + HIDDEN[0] + HIDDEN[1]        # 80: w1(16) ++ w2(32) ++ wm_pad(32)
_V_ROWS = 16                                     # 9 used vector rows, padded to 16


# ---------------------------------------------------------------------------
# Pallas kernel: fused LayerNorm -> MLP -> Gaussian mean head
# ---------------------------------------------------------------------------
def ppo_actor_kernel(obs_ref, w_ref, v_ref, act_ref):
    # v rows: 0 ln0_g | 1 ln0_b | 2 b1 | 3 ln1_g | 4 ln1_b | 5 b2 | 6 ln2_g | 7 ln2_b
    #         8 bm (zero-padded to 32 cols) | 9..15 padding
    v = v_ref[...]

    def layernorm(x, g, b):
        # Single-pass stats: s1 and s2 are independent cross-lane reductions,
        # so they pipeline in the XLU instead of serializing.
        inv_n = 1.0 / x.shape[-1]
        s1 = jnp.sum(x, axis=-1, keepdims=True)
        s2 = jnp.sum(x * x, axis=-1, keepdims=True)
        mu = s1 * inv_n
        var = s2 * inv_n - mu * mu
        return (x - mu) * jax.lax.rsqrt(var + LN_EPS) * g + b

    # MLPBase: feature normalization + [Linear -> ReLU -> LayerNorm] x 2
    x = layernorm(obs_ref[...], v[0:1, :OBS_DIM], v[1:2, :OBS_DIM])

    h1 = jnp.dot(x, w_ref[0:OBS_DIM, :],
                 preferred_element_type=jnp.float32) + v[2:3, :]
    h1 = layernorm(jnp.maximum(h1, 0.0), v[3:4, :], v[4:5, :])   # ReLU (activation_id=1)

    h2 = jnp.dot(h1, w_ref[OBS_DIM:OBS_DIM + HIDDEN[0], :],
                 preferred_element_type=jnp.float32) + v[5:6, :]
    h2 = layernorm(jnp.maximum(h2, 0.0), v[6:7, :], v[7:8, :])

    # DiagGaussian mean head. wm is zero-padded to 32 output columns in the slab,
    # so only the first ACT_DIM columns of `mean` are meaningful.
    mean = jnp.dot(h2, w_ref[OBS_DIM + HIDDEN[0]:, :],
                   preferred_element_type=jnp.float32) + v[8:9, :]

    # deterministic=True -> actions = dist.mode() = mean
    act_ref[...] = mean[:, :ACT_DIM]


# ---------------------------------------------------------------------------
# Parameter packing: 16 tensors -> 2 VMEM slabs (fewer DMA descriptors)
# ---------------------------------------------------------------------------
def _pack_params(p):
    def pad_cols(a):
        return jnp.pad(a, ((0, 0), (0, _W - a.shape[1])))

    w_slab = jnp.concatenate(
        [p["w1"], p["w2"], pad_cols(p["wm"])], axis=0).astype(jnp.float32)   # (80, 32)

    v_rows = jnp.concatenate(
        [pad_cols(p["ln0_g"]), pad_cols(p["ln0_b"]),
         p["b1"], p["ln1_g"], p["ln1_b"],
         p["b2"], p["ln2_g"], p["ln2_b"],
         pad_cols(p["bm"])], axis=0)                                          # (9, 32)
    v_slab = jnp.pad(
        v_rows, ((0, _V_ROWS - v_rows.shape[0]), (0, 0))).astype(jnp.float32)  # (16, 32)
    return w_slab, v_slab


# ---------------------------------------------------------------------------
# Wrapper: pallas_call + batch-independent log-prob + rnn_states passthrough
# ---------------------------------------------------------------------------
def ppo_actor_forward(obs, rnn_states, masks, params, deterministic=True):
    # masks are unused in the non-recurrent forward path (as in the PyTorch code).
    del masks
    assert deterministic, "stochastic sampling handled outside the kernel"
    # TODO(synk): stochastic sampling (deterministic=False) and the recurrent GRU
    # branch (use_recurrent_policy=True) are not exercised in this config.

    B = obs.shape[0]
    w_slab, v_slab = _pack_params(params)

    # Batch tiling: large rollout batches get 512-row tiles (VMEM-resident weights
    # across grid steps, "parallel" axis for v7x's 2 TCs); small batches run in one shot.
    tile_b = 512 if (B >= 512 and B % 512 == 0) else B
    grid = (B // tile_b,)

    cost = pl.CostEstimate(
        flops=2 * B * (OBS_DIM * HIDDEN[0] + HIDDEN[0] * HIDDEN[1] + HIDDEN[1] * _W),
        transcendentals=0,
        bytes_accessed=4 * (B * OBS_DIM + _W_ROWS * _W + _V_ROWS * _W + B * ACT_DIM),
    )

    actions = pl.pallas_call(
        ppo_actor_kernel,
        out_shape=jax.ShapeDtypeStruct((B, ACT_DIM), jnp.float32),
        grid=grid,
        in_specs=[
            pl.BlockSpec((tile_b, OBS_DIM), lambda i: (i, 0)),
            pl.BlockSpec((_W_ROWS, _W), lambda i: (0, 0)),   # weight slab, VMEM-resident
            pl.BlockSpec((_V_ROWS, _W), lambda i: (0, 0)),   # vector slab, VMEM-resident
        ],
        out_specs=pl.BlockSpec((tile_b, ACT_DIM), lambda i: (i, 0)),
        compiler_params=pltpu.CompilerParams(dimension_semantics=("parallel",)),
        cost_estimate=cost,
    )(obs, w_slab, v_slab)

    # With actions == mean, Normal(mean, std).log_prob(actions) = -log_std - 0.5*log(2*pi)
    # per dim: batch-independent, so compute it outside the kernel (no narrow (B,1)
    # masked store / extra output DMA).
    lp = jnp.sum(-params["log_std"] - 0.5 * LOG_2PI, axis=-1, keepdims=True)   # (1, 1)
    log_probs = jnp.broadcast_to(lp, (B, 1))

    return actions, log_probs, rnn_states


# ---------------------------------------------------------------------------
# Deterministic parameter initialization (synthetic; shapes from __init__)
# ---------------------------------------------------------------------------
def init_params(key):
    ks = jax.random.split(key, 8)
    h1, h2 = HIDDEN
    return {
        # feature normalization (LayerNorm over obs_dim)
        "ln0_g": jnp.ones((1, OBS_DIM), jnp.float32),
        "ln0_b": jnp.zeros((1, OBS_DIM), jnp.float32),
        # MLP layer 1
        "w1": 0.1 * jax.random.normal(ks[0], (OBS_DIM, h1), jnp.float32),
        "b1": jnp.zeros((1, h1), jnp.float32),
        "ln1_g": jnp.ones((1, h1), jnp.float32),
        "ln1_b": jnp.zeros((1, h1), jnp.float32),
        # MLP layer 2
        "w2": 0.1 * jax.random.normal(ks[1], (h1, h2), jnp.float32),
        "b2": jnp.zeros((1, h2), jnp.float32),
        "ln2_g": jnp.ones((1, h2), jnp.float32),
        "ln2_b": jnp.zeros((1, h2), jnp.float32),
        # DiagGaussian head (gain-scaled mean layer + learned log_std)
        "wm": 0.01 * jax.random.normal(ks[2], (h2, ACT_DIM), jnp.float32),
        "bm": jnp.zeros((1, ACT_DIM), jnp.float32),
        "log_std": 0.1 * jax.random.normal(ks[3], (1, ACT_DIM), jnp.float32),
    }


# ---------------------------------------------------------------------------
# Pure-JAX reference (for a correctness sanity check)
# ---------------------------------------------------------------------------
def reference_forward(obs, params):
    def ln(x, g, b):
        mu = jnp.mean(x, -1, keepdims=True)
        var = jnp.mean((x - mu) ** 2, -1, keepdims=True)
        return (x - mu) / jnp.sqrt(var + LN_EPS) * g + b

    x = ln(obs, params["ln0_g"], params["ln0_b"])
    h1 = ln(jnp.maximum(x @ params["w1"] + params["b1"], 0.0),
            params["ln1_g"], params["ln1_b"])
    h2 = ln(jnp.maximum(h1 @ params["w2"] + params["b2"], 0.0),
            params["ln2_g"], params["ln2_b"])
    mean = h2 @ params["wm"] + params["bm"]
    log_std = params["log_std"]
    lp = -log_std - 0.5 * LOG_2PI            # (actions == mean) quadratic term is 0
    lp = jnp.broadcast_to(lp, mean.shape).sum(-1, keepdims=True)
    return mean, lp


if __name__ == "__main__":
    key = jax.random.PRNGKey(0)
    k_obs, k_par = jax.random.split(key)

    obs = jax.random.normal(k_obs, (BATCH, OBS_DIM), jnp.float32)
    rnn_states = jnp.zeros((BATCH, HIDDEN[-1]), jnp.float32)  # passthrough
    masks = jnp.ones((BATCH, 1), jnp.float32)
    params = init_params(k_par)

    actions, log_probs, rnn_states_out = ppo_actor_forward(
        obs, rnn_states, masks, params, deterministic=True
    )
    jax.block_until_ready((actions, log_probs, rnn_states_out))

    ref_actions, ref_lp = reference_forward(obs, params)
    np.testing.assert_allclose(np.asarray(actions), np.asarray(ref_actions),
                               rtol=1e-4, atol=1e-4)
    np.testing.assert_allclose(np.asarray(log_probs), np.asarray(ref_lp),
                               rtol=1e-4, atol=1e-4)
    assert actions.shape == (BATCH, ACT_DIM)
    assert log_probs.shape == (BATCH, 1)
    assert rnn_states_out.shape == rnn_states.shape

    print("KERNEL_OK")
</pallas_src>

<mosaic_0001>
module attributes {stable_mosaic.version = 11 : i64} {
  func.func @ppo_actor_kernel(%arg0: i32, %arg1: memref<8x16xf32, #tpu.memory_space<vmem>>, %arg2: memref<80x32xf32, #tpu.memory_space<vmem>>, %arg3: memref<16x32xf32, #tpu.memory_space<vmem>>, %arg4: memref<8x4xf32, #tpu.memory_space<vmem>>) attributes {dimension_semantics = [#tpu.dimension_semantics<parallel>], iteration_bounds = array<i64: 1>, scalar_prefetch = 0 : i64, scratch_operands = 0 : i64, tpu.core_type = #tpu.core_type<tc>, window_params = [{transform_indices = @transform_0, window_bounds = array<i64: 8, 16>}, {pipeline_mode = #tpu.pipeline_mode<synchronous>, transform_indices = @transform_1, window_bounds = array<i64: 80, 32>}, {pipeline_mode = #tpu.pipeline_mode<synchronous>, transform_indices = @transform_2, window_bounds = array<i64: 16, 32>}, {transform_indices = @transform_3, window_bounds = array<i64: 8, 4>}]} {
    %c0 = arith.constant 0 : index
    %c0_0 = arith.constant 0 : index
    %0 = vector.load %arg3[%c0, %c0_0] : memref<16x32xf32, #tpu.memory_space<vmem>>, vector<16x32xf32>
    %c0_1 = arith.constant 0 : index
    %c0_2 = arith.constant 0 : index
    %1 = vector.load %arg1[%c0_1, %c0_2] : memref<8x16xf32, #tpu.memory_space<vmem>>, vector<8x16xf32>
    %2 = vector.extract_strided_slice %0 {offsets = [0, 0], sizes = [1, 16], strides = [1, 1]} : vector<16x32xf32> to vector<1x16xf32>
    %3 = vector.extract_strided_slice %0 {offsets = [1, 0], sizes = [1, 16], strides = [1, 1]} : vector<16x32xf32> to vector<1x16xf32>
    %cst = arith.constant dense<0.000000e+00> : vector<8xf32>
    %4 = vector.multi_reduction <add>, %1, %cst [1] : vector<8x16xf32> to vector<8xf32>
    %5 = vector.shape_cast %4 : vector<8xf32> to vector<8x1xf32>
    %6 = arith.mulf %1, %1 : vector<8x16xf32>
    %cst_3 = arith.constant dense<0.000000e+00> : vector<8xf32>
    %7 = vector.multi_reduction <add>, %6, %cst_3 [1] : vector<8x16xf32> to vector<8xf32>
    %8 = vector.shape_cast %7 : vector<8xf32> to vector<8x1xf32>
    %cst_4 = arith.constant 6.250000e-02 : f32
    %9 = vector.broadcast %cst_4 : f32 to vector<8x1xf32>
    %10 = arith.mulf %5, %9 : vector<8x1xf32>
    %cst_5 = arith.constant 6.250000e-02 : f32
    %11 = vector.broadcast %cst_5 : f32 to vector<8x1xf32>
    %12 = arith.mulf %8, %11 : vector<8x1xf32>
    %13 = arith.mulf %10, %10 : vector<8x1xf32>
    %14 = arith.subf %12, %13 : vector<8x1xf32>
    %15 = vector.broadcast %10 : vector<8x1xf32> to vector<8x16xf32>
    %16 = arith.subf %1, %15 : vector<8x16xf32>
    %cst_6 = arith.constant 9.99999974E-6 : f32
    %17 = vector.broadcast %cst_6 : f32 to vector<8x1xf32>
    %18 = arith.addf %14, %17 : vector<8x1xf32>
    %19 = math.rsqrt %18 : vector<8x1xf32>
    %20 = vector.broadcast %19 : vector<8x1xf32> to vector<8x16xf32>
    %21 = arith.mulf %16, %20 : vector<8x16xf32>
    %22 = vector.broadcast %2 : vector<1x16xf32> to vector<8x16xf32>
    %23 = arith.mulf %21, %22 : vector<8x16xf32>
    %24 = vector.broadcast %3 : vector<1x16xf32> to vector<8x16xf32>
    %25 = arith.addf %23, %24 : vector<8x16xf32>
    %c0_7 = arith.constant 0 : index
    %c0_8 = arith.constant 0 : index
    %26 = vector.load %arg2[%c0_7, %c0_8] : memref<80x32xf32, #tpu.memory_space<vmem>>, vector<16x32xf32>
    %cst_9 = arith.constant dense<0.000000e+00> : vector<8x32xf32>
    %27 = tpu.matmul %25, %26, %cst_9 {dimension_numbers = #tpu.dot_dimension_numbers<[1], [0], [0], [1], [0, 0, 1, 1], [], []>} : vector<8x16xf32>, vector<16x32xf32>, vector<8x32xf32> -> vector<8x32xf32>
    %28 = vector.extract_strided_slice %0 {offsets = [2, 0], sizes = [1, 32], strides = [1, 1]} : vector<16x32xf32> to vector<1x32xf32>
    %29 = vector.broadcast %28 : vector<1x32xf32> to vector<8x32xf32>
    %30 = arith.addf %27, %29 : vector<8x32xf32>
    %cst_10 = arith.constant 0.000000e+00 : f32
    %31 = vector.broadcast %cst_10 : f32 to vector<8x32xf32>
    %32 = arith.maximumf %30, %31 : vector<8x32xf32>
    %33 = vector.extract_strided_slice %0 {offsets = [3, 0], sizes = [1, 32], strides = [1, 1]} : vector<16x32xf32> to vector<1x32xf32>
    %34 = vector.extract_strided_slice %0 {offsets = [4, 0], sizes = [1, 32], strides = [1, 1]} : vector<16x32xf32> to vector<1x32xf32>
    %cst_11 = arith.constant dense<0.000000e+00> : vector<8xf32>
    %35 = vector.multi_reduction <add>, %32, %cst_11 [1] : vector<8x32xf32> to vector<8xf32>
    %36 = vector.shape_cast %35 : vector<8xf32> to vector<8x1xf32>
    %37 = arith.mulf %32, %32 : vector<8x32xf32>
    %cst_12 = arith.constant dense<0.000000e+00> : vector<8xf32>
    %38 = vector.multi_reduction <add>, %37, %cst_12 [1] : vector<8x32xf32> to vector<8xf32>
    %39 = vector.shape_cast %38 : vector<8xf32> to vector<8x1xf32>
    %cst_13 = arith.constant 3.125000e-02 : f32
    %40 = vector.broadcast %cst_13 : f32 to vector<8x1xf32>
    %41 = arith.mulf %36, %40 : vector<8x1xf32>
    %cst_14 = arith.constant 3.125000e-02 : f32
    %42 = vector.broadcast %cst_14 : f32 to vector<8x1xf32>
    %43 = arith.mulf %39, %42 : vector<8x1xf32>
    %44 = arith.mulf %41, %41 : vector<8x1xf32>
    %45 = arith.subf %43, %44 : vector<8x1xf32>
    %46 = vector.broadcast %41 : vector<8x1xf32> to vector<8x32xf32>
    %47 = arith.subf %32, %46 : vector<8x32xf32>
    %cst_15 = arith.constant 9.99999974E-6 : f32
    %48 = vector.broadcast %cst_15 : f32 to vector<8x1xf32>
    %49 = arith.addf %45, %48 : vector<8x1xf32>
    %50 = math.rsqrt %49 : vector<8x1xf32>
    %51 = vector.broadcast %50 : vector<8x1xf32> to vector<8x32xf32>
    %52 = arith.mulf %47, %51 : vector<8x32xf32>
    %53 = vector.broadcast %33 : vector<1x32xf32> to vector<8x32xf32>
    %54 = arith.mulf %52, %53 : vector<8x32xf32>
    %55 = vector.broadcast %34 : vector<1x32xf32> to vector<8x32xf32>
    %56 = arith.addf %54, %55 : vector<8x32xf32>
    %c16 = arith.constant 16 : index
    %c0_16 = arith.constant 0 : index
    %57 = vector.load %arg2[%c16, %c0_16] : memref<80x32xf32, #tpu.memory_space<vmem>>, vector<32x32xf32>
    %cst_17 = arith.constant dense<0.000000e+00> : vector<8x32xf32>
    %58 = tpu.matmul %56, %57, %cst_17 {dimension_numbers = #tpu.dot_dimension_numbers<[1], [0], [0], [1], [0, 0, 1, 1], [], []>} : vector<8x32xf32>, vector<32x32xf32>, vector<8x32xf32> -> vector<8x32xf32>
    %59 = vector.extract_strided_slice %0 {offsets = [5, 0], sizes = [1, 32], strides = [1, 1]} : vector<16x32xf32> to vector<1x32xf32>
    %60 = vector.broadcast %59 : vector<1x32xf32> to vector<8x32xf32>
    %61 = arith.addf %58, %60 : vector<8x32xf32>
    %cst_18 = arith.constant 0.000000e+00 : f32
    %62 = vector.broadcast %cst_18 : f32 to vector<8x32xf32>
    %63 = arith.maximumf %61, %62 : vector<8x32xf32>
    %64 = vector.extract_strided_slice %0 {offsets = [6, 0], sizes = [1, 32], strides = [1, 1]} : vector<16x32xf32> to vector<1x32xf32>
    %65 = vector.extract_strided_slice %0 {offsets = [7, 0], sizes = [1, 32], strides = [1, 1]} : vector<16x32xf32> to vector<1x32xf32>
    %cst_19 = arith.constant dense<0.000000e+00> : vector<8xf32>
    %66 = vector.multi_reduction <add>, %63, %cst_19 [1] : vector<8x32xf32> to vector<8xf32>
    %67 = vector.shape_cast %66 : vector<8xf32> to vector<8x1xf32>
    %68 = arith.mulf %63, %63 : vector<8x32xf32>
    %cst_20 = arith.constant dense<0.000000e+00> : vector<8xf32>
    %69 = vector.multi_reduction <add>, %68, %cst_20 [1] : vector<8x32xf32> to vector<8xf32>
    %70 = vector.shape_cast %69 : vector<8xf32> to vector<8x1xf32>
    %cst_21 = arith.constant 3.125000e-02 : f32
    %71 = vector.broadcast %cst_21 : f32 to vector<8x1xf32>
    %72 = arith.mulf %67, %71 : vector<8x1xf32>
    %cst_22 = arith.constant 3.125000e-02 : f32
    %73 = vector.broadcast %cst_22 : f32 to vector<8x1xf32>
    %74 = arith.mulf %70, %73 : vector<8x1xf32>
    %75 = arith.mulf %72, %72 : vector<8x1xf32>
    %76 = arith.subf %74, %75 : vector<8x1xf32>
    %77 = vector.broadcast %72 : vector<8x1xf32> to vector<8x32xf32>
    %78 = arith.subf %63, %77 : vector<8x32xf32>
    %cst_23 = arith.constant 9.99999974E-6 : f32
    %79 = vector.broadcast %cst_23 : f32 to vector<8x1xf32>
    %80 = arith.addf %76, %79 : vector<8x1xf32>
    %81 = math.rsqrt %80 : vector<8x1xf32>
    %82 = vector.broadcast %81 : vector<8x1xf32> to vector<8x32xf32>
    %83 = arith.mulf %78, %82 : vector<8x32xf32>
    %84 = vector.broadcast %64 : vector<1x32xf32> to vector<8x32xf32>
    %85 = arith.mulf %83, %84 : vector<8x32xf32>
    %86 = vector.broadcast %65 : vector<1x32xf32> to vector<8x32xf32>
    %87 = arith.addf %85, %86 : vector<8x32xf32>
    %c48 = arith.constant 48 : index
    %c0_24 = arith.constant 0 : index
    %88 = vector.load %arg2[%c48, %c0_24] : memref<80x32xf32, #tpu.memory_space<vmem>>, vector<32x32xf32>
    %cst_25 = arith.constant dense<0.000000e+00> : vector<8x32xf32>
    %89 = tpu.matmul %87, %88, %cst_25 {dimension_numbers = #tpu.dot_dimension_numbers<[1], [0], [0], [1], [0, 0, 1, 1], [], []>} : vector<8x32xf32>, vector<32x32xf32>, vector<8x32xf32> -> vector<8x32xf32>
    %90 = vector.extract_strided_slice %0 {offsets = [8, 0], sizes = [1, 32], strides = [1, 1]} : vector<16x32xf32> to vector<1x32xf32>
    %91 = vector.broadcast %90 : vector<1x32xf32> to vector<8x32xf32>
    %92 = arith.addf %89, %91 : vector<8x32xf32>
    %93 = vector.extract_strided_slice %92 {offsets = [0, 0], sizes = [8, 4], strides = [1, 1]} : vector<8x32xf32> to vector<8x4xf32>
    %c0_26 = arith.constant 0 : index
    %c0_27 = arith.constant 0 : index
    %94 = vector.load %arg4[%c0_26, %c0_27] : memref<8x4xf32, #tpu.memory_space<vmem>>, vector<8x4xf32>
    tpu.vector_store %arg4[%c0_26, %c0_27], %93 {strides = array<i32>} : memref<8x4xf32, #tpu.memory_space<vmem>>, vector<8x4xf32>,
    return
  }
  func.func @transform_0(%arg0: i32) -> (i32, i32) {
    %c0_i32 = arith.constant 0 : i32
    %c0_i32_0 = arith.constant 0 : i32
    return %arg0, %c0_i32 : i32, i32
  }
  func.func @transform_1(%arg0: i32) -> (i32, i32) {
    %c0_i32 = arith.constant 0 : i32
    %c0_i32_0 = arith.constant 0 : i32
    %c0_i32_1 = arith.constant 0 : i32
    return %c0_i32, %c0_i32_0 : i32, i32
  }
  func.func @transform_2(%arg0: i32) -> (i32, i32) {
    %c0_i32 = arith.constant 0 : i32
    %c0_i32_0 = arith.constant 0 : i32
    %c0_i32_1 = arith.constant 0 : i32
    return %c0_i32, %c0_i32_0 : i32, i32
  }
  func.func @transform_3(%arg0: i32) -> (i32, i32) {
    %c0_i32 = arith.constant 0 : i32
    %c0_i32_0 = arith.constant 0 : i32
    return %arg0, %c0_i32 : i32, i32
  }
}

</mosaic_0001>

<bundles_post_ra>
// kernel: tpu_custom_call.1
= control target key start
LH: loop header
LB: loop body
LE: loop exit
PB: predicated region body
PF: predicated region fallthrough
CT: control target
= control target key end

     0   :  { %vm17_vm0 = vcmask 130048   ;;  %v412_v4 = vmov 0.0|0.0   ;;  %vm413_vm1 = vmmov 0   ;;  %v414_v7 = vmov 0.0   ;;  %s518_s0 = inlined_call_operand.vmem [shape: f32[8,16], index: 0, kind: input, shape index: {}]   ;;  %s519_s1 = inlined_call_operand.vmem [shape: f32[80,32], index: 1, kind: input, shape index: {}]   ;;  %s520_s2 = inlined_call_operand.vmem [shape: f32[16,32], index: 2, kind: input, shape index: {}]   ;;  %s521_s3 = inlined_call_operand.vmem [shape: f32[8,4], index: 3, kind: output, shape index: {}]  }
   0x1   :  { %v16_v0 = vld [vmem:[%s518_s0] sm:$0xff]  ;;  %388 = vmatprep.subr.bf16.mxu0 %v412_v4  ;;  %v44_v6 = vld [vmem:[%s519_s1 + $0x8] sm:$0xff]  ;;  %363 = vmatprep.mubr.msk.f32.mxu0 %vm413_vm1, %v414_v7  ;;  %v33_v15 = vlaneseq  ;;  %vm123_vm2 = vcmask 261120   ;;  %v149_v37 = vld [vmem:[%s519_s1 + $0x10] sm:$0xff]  ;;  %vm337_vm3 = vcmask 31744  }
   0x2   :  { %v18_v1 = vsel %vm17_vm0, %v16_v0, 0.0  ;;  %v21_v2 = vmul.f32 %v16_v0, %v16_v0  ;;  %v43_v5 = vld [vmem:[%s519_s1] sm:$0xff]  ;;  %391 = vmatprep.subr.bf16.mxu1 %v412_v4  ;;  %374 = vmatprep.mubr.msk.f32.mxu1 %vm413_vm1, %v414_v7  ;;  %v150_v38 = vld [vmem:[%s519_s1 + $0x18] sm:$0xff]  ;;  %v152_v41 = vld [vmem:[%s519_s1 + $0x28] sm:$0xff] }
   0x3   :  { %19 = vadd.xlane.f32.xlu0 %v18_v1  ;;  %v389_v8 = vpack.c.bf16 %v44_v6, %v43_v5  ;;  %v451_v17 = vshrl.u32 %v33_v15, 7  ;;  %v457_v19 = vld [vmem:[%s520_s2] sm:$0xff]  ;;  %v392_v40 = vpack.c.bf16 %v150_v38, %v149_v37  ;;  %v256_v5 = vld [vmem:[%s519_s1 + $0x30] sm:$0xff]  ;;  %v257_v6 = vld [vmem:[%s519_s1 + $0x38] sm:$0xff] }
   0x4   :  { %v22_v3 = vsel %vm17_vm0, %v21_v2, 0.0  ;;  %v151_v39 = vld [vmem:[%s519_s1 + $0x20] sm:$0xff] }
   0x5   :  { %390 = vmatpush3.bf16.msra.mxu0 %v389_v8  ;;  %v35_v18 = vsub.s32 0, %v451_v17  ;;  %v40_v20 = vsub.s32 1, %v451_v17  ;;  %v47_v28 = vsub.s32 2, %v451_v17  ;;  %393 = vmatpush3.bf16.msra.mxu1 %v392_v40  ;;  %v395_v42 = vpack.c.bf16 %v152_v41, %v151_v39  ;;  %v258_v8 = vld [vmem:[%s519_s1 + $0x40] sm:$0xff] }
   0x6   :  { %397 = vmatprep.subr.bf16.mxu0 %v412_v4  ;;  %394 = vmatprep.subr.bf16.mxu1 %v412_v4  ;;  %v141_v50 = vsub.s32 3, %v451_v17  ;;  %v146_v51 = vsub.s32 4, %v451_v17  ;;  %v155_v59 = vsub.s32 5, %v451_v17 }
   0x7   :  { %23 = vadd.xlane.f32.xlu0 %v22_v3  ;;  %v36_v22 = vrot.slane %v457_v19, %v35_v18  ;;  %v41_v25 = vrot.slane %v457_v19, %v40_v20  ;;  %v48_v29 = vrot.slane %v457_v19, %v47_v28 }
   0x8   :  { %v142_v53 = vrot.slane %v457_v19, %v141_v50  ;;  %v147_v56 = vrot.slane %v457_v19, %v146_v51  ;;  %v156_v60 = vrot.slane %v457_v19, %v155_v59 }
   0x9   :  { %396 = vmatpush3.bf16.msra.mxu1 %v395_v42 }
  0x90   :  { %v20_v9 = vpop.xlane.xlu0 %19 }
  0x91   :  { %v25_v10 = vmul.f32 0.0625, %v20_v9  ;;  %v259_v9 = vld [vmem:[%s519_s1 + $0x48] sm:$0xff] }
  0x93   :  { %v27_v12 = vmul.f32 %v25_v10, %v25_v10  ;;  %v29_v21 = vsub.f32 %v16_v0, %v25_v10  ;;  %v401_v10 = vpack.c.bf16 %v259_v9, %v258_v8 }
  0x94   :  { %v24_v11 = vpop.xlane.xlu0 %23 }
  0x95   :  { %v26_v13 = vmul.f32 0.0625, %v24_v11 }
  0x97   :  { %v28_v14 = vsub.f32 %v26_v13, %v27_v12 }
  0x99   :  { %v30_v16 = vadd.f32 1e-05, %v28_v14 }
  0x9b   :  { %406 = vrsqrt.f32 %v30_v16 }
  0xa5   :  { %v407_v23 = vpop.eup %406 }
  0xa6   :  { %v32_v24 = vmul.f32 %v407_v23, %v29_v21  ;;  %v253_v21 = vsub.s32 7, %v451_v17 }
  0xa8   :  { %v37_v26 = vmul.f32 %v36_v22, %v32_v24 }
  0xaa   :  { %v42_v27 = vadd.f32 %v41_v25, %v37_v26  ;;  %v254_v26 = vrot.slane %v457_v19, %v253_v21 }
  0xac   :  { %364 = vmatmul.mubr.msk.f32.vlgmr.msra.gmra.mrb[0].mxu0 %vm17_vm0, %v42_v27 }
  0xad   :  { %385 = vmatprep.mubr.msk.f32.mxu0 %vm413_vm1, %v414_v7  ;;  %v398_v7 = vpack.c.bf16 %v257_v6, %v256_v5 }
  0xaf   :  { %399 = vmatpush3.bf16.msra.mxu0 %v398_v7 }
  0xb0   :  { %400 = vmatprep.subr.bf16.mxu0 %v412_v4  ;;  %v248_v4 = vsub.s32 6, %v451_v17 }
  0xb2   :  { %v249_v23 = vrot.slane %v457_v19, %v248_v4 }
  0xb3   :  { %402 = vmatpush3.bf16.msra.mxu0 %v401_v10 }
 0x17f   :  { %v118_v30 = vpop.f32.mrb[0].mxu0 }
 0x180   :  { %v119_v31 = vadd.f32 %v118_v30, %v48_v29  ;;  %v365_v32 = vpop.f32.mrb[1].mxu0  ;;  %v15_v29 = vld [vmem:[%s520_s2 + $0x8] sm:$0xff] }
 0x181   :  { %v263_v30 = vrot.slane %v15_v29, %v35_v18 }
 0x182   :  { %v122_v33 = vmax.f32 %v119_v31, 0.0 }
 0x184   :  { %v124_v34 = vsel %vm123_vm2, %v122_v33, 0.0  ;;  %v127_v35 = vmul.f32 %v122_v33, %v122_v33 }
 0x185   :  { %125 = vadd.xlane.f32.xlu1 %v124_v34 }
 0x186   :  { %v128_v36 = vsel %vm123_vm2, %v127_v35, 0.0 }
 0x189   :  { %129 = vadd.xlane.f32.xlu1 %v128_v36 }
 0x212   :  { %v126_v43 = vpop.xlane.xlu1 %125 }
 0x213   :  { %v131_v44 = vmul.f32 0.03125, %v126_v43 }
 0x215   :  { %v133_v46 = vmul.f32 %v131_v44, %v131_v44  ;;  %v135_v52 = vsub.f32 %v122_v33, %v131_v44 }
 0x216   :  { %v130_v45 = vpop.xlane.xlu1 %129 }
 0x217   :  { %v132_v47 = vmul.f32 0.03125, %v130_v45 }
 0x219   :  { %v134_v48 = vsub.f32 %v132_v47, %v133_v46 }
 0x21b   :  { %v136_v49 = vadd.f32 1e-05, %v134_v48 }
 0x21d   :  { %408 = vrsqrt.f32 %v136_v49 }
 0x227   :  { %v409_v54 = vpop.eup %408 }
 0x228   :  { %v138_v55 = vmul.f32 %v409_v54, %v135_v52 }
 0x22a   :  { %v143_v57 = vmul.f32 %v142_v53, %v138_v55 }
 0x22c   :  { %v148_v58 = vadd.f32 %v147_v56, %v143_v57 }
 0x22e   :  { %375 = vmatmul.mubr.msk.f32.vlgmr.msra.gmra.mrb[0].mxu1 %vm123_vm2, %v148_v58 }
 0x301   :  { %v226_v61 = vpop.f32.mrb[0].mxu1 }
 0x302   :  { %v227_v62 = vadd.f32 %v226_v61, %v156_v60  ;;  %v376_v63 = vpop.f32.mrb[1].mxu1 }
 0x304   :  { %v230_v0 = vmax.f32 %v227_v62, 0.0 }
 0x306   :  { %v231_v1 = vsel %vm123_vm2, %v230_v0, 0.0  ;;  %v234_v2 = vmul.f32 %v230_v0, %v230_v0 }
 0x307   :  { %232 = vadd.xlane.f32.xlu0 %v231_v1 }
 0x308   :  { %v235_v3 = vsel %vm123_vm2, %v234_v2, 0.0 }
 0x309   :  { %236 = vadd.xlane.f32.xlu1 %v235_v3 }
 0x394   :  { %v233_v11 = vpop.xlane.xlu0 %232 }
 0x395   :  { %v238_v12 = vmul.f32 0.03125, %v233_v11 }
 0x396   :  { %v237_v13 = vpop.xlane.xlu1 %236 }
 0x397   :  { %v240_v14 = vmul.f32 %v238_v12, %v238_v12  ;;  %v239_v15 = vmul.f32 0.03125, %v237_v13  ;;  %v242_v22 = vsub.f32 %v230_v0, %v238_v12 }
 0x399   :  { %v241_v16 = vsub.f32 %v239_v15, %v240_v14 }
 0x39b   :  { %v243_v20 = vadd.f32 1e-05, %v241_v16 }
 0x39d   :  { %410 = vrsqrt.f32 %v243_v20 }
 0x3a7   :  { %v411_v24 = vpop.eup %410 }
 0x3a8   :  { %v245_v25 = vmul.f32 %v411_v24, %v242_v22 }
 0x3aa   :  { %v250_v27 = vmul.f32 %v249_v23, %v245_v25 }
 0x3ac   :  { %v255_v28 = vadd.f32 %v254_v26, %v250_v27 }
 0x3ae   :  { %386 = vmatmul.mubr.msk.f32.vlgmr.msra.gmra.mrb[2].mxu0 %vm123_vm2, %v255_v28 }
 0x481   :  { %v333_v31 = vpop.f32.mrb[2].mxu0 }
 0x482   :  { %v334_v32 = vadd.f32 %v333_v31, %v263_v30  ;;  %v387_v33 = vpop.f32.mrb[3].mxu0 }
 0x484   :  { %338 = vst.msk [vmem:[%s521_s3] sm:$0xff] %vm337_vm3, %v334_v32 }

</bundles_post_ra>
